<compile_context>
chip_gen: v7x
topology: tpu7x:2x2x1
jax: 0.10.0
libtpu: 0.0.40
codegen_flags: <defaults>
</compile_context>

<pallas_src>
import math

import jax
import jax.numpy as jnp
from jax.experimental import pallas as pl
from jax.experimental.pallas import tpu as pltpu


# ----------------------------------------------------------------------------
# PE table construction (host side, pure JAX) — mirrors the PyTorch buffer.
# ----------------------------------------------------------------------------
def make_pe_table(d_model, max_len=1000, dtype=jnp.float32):
    assert d_model % 2 == 0, "d_model must be even (as in the PyTorch module)"
    position = jnp.arange(max_len, dtype=jnp.float32)[:, None]          # [L, 1]
    div_term = jnp.exp(
        jnp.arange(0, d_model, 2, dtype=jnp.float32) * (-math.log(10000.0) / d_model)
    )                                                                   # [D/2]
    pe = jnp.zeros((max_len, d_model), dtype=jnp.float32)
    pe = pe.at[:, 0::2].set(jnp.sin(position * div_term))
    pe = pe.at[:, 1::2].set(jnp.cos(position * div_term))
    return pe.astype(dtype)


# ----------------------------------------------------------------------------
# Kernels (pure elementwise; mem-bound)
# ----------------------------------------------------------------------------
def _add_pe_kernel(x_ref, pe_ref, o_ref):
    # x_ref: (TB, ts*D), pe_ref: (1, ts*D) -> broadcast add over batch rows.
    o_ref[...] = x_ref[...] + pe_ref[...]


def _add_pe_dropout_kernel(x_ref, pe_ref, m_ref, o_ref):
    # m_ref already holds {0, 1/(1-p)} in the output dtype: fused add + scale,
    # no converts / compares / selects on the VPU.
    o_ref[...] = (x_ref[...] + pe_ref[...]) * m_ref[...]


# ----------------------------------------------------------------------------
# Tile selection: biggest (TB, ts) whose double-buffered working set fits VMEM.
# ----------------------------------------------------------------------------
def _choose_tiles(B, S, D, itemsize, with_mask, vmem_budget_bytes):
    # Lane-dense constraint on the flattened (seq * d_model) axis: the block's
    # last dim is ts*D, which must be a multiple of 128 unless ts == S (full
    # extent). `align` is the smallest seq step that keeps ts*D % 128 == 0.
    align = 128 // math.gcd(D, 128)

    def fits(TB, ts):
        per_elem = 4 * itemsize                      # x + out, double-buffered
        if with_mask:
            per_elem += 2 * itemsize                 # dropout mask, double-buffered
        pe_bytes = 2 * ts * D * itemsize             # pe row block, double-buffered
        return TB * ts * D * per_elem + pe_bytes <= vmem_budget_bytes

    ts_cands = [S] + [t for t in (1024, 512, 256, 128, 64, 32, 16, 8, align)
                      if t < S and t % align == 0]
    tb_cands = [B] + [t for t in (64, 32, 16, 8) if t < B]   # TB<B must be 8-aligned
    for ts in ts_cands:
        for TB in tb_cands:
            if fits(TB, ts):
                return TB, ts
    # Fallback: smallest legal tile (raise vmem_budget_bytes if this ever trips).
    return min(B, 8), align


# ----------------------------------------------------------------------------
# Wrapper
# ----------------------------------------------------------------------------
def sinusoidal_positional_encoding(
    x, pe_table, *, p=0.0, training=False, rng_key=None, vmem_budget_bytes=12 << 20
):
    """x: [B, S, d_model]; pe_table: [max_len, d_model] -> [B, S, d_model]."""
    B, S, D = x.shape
    assert S <= pe_table.shape[0], "sequence length exceeds max_len of PE table"
    dtype = x.dtype
    itemsize = jnp.dtype(dtype).itemsize

    apply_dropout = bool(training) and float(p) > 0.0
    keep_p = 1.0 - float(p)

    # Flatten (S, D) into one lane-dense axis: free reshape on a contiguous array;
    # keeps vector stores unmasked even when d_model is not a multiple of 128.
    L = S * D
    x2 = x.reshape(B, L)
    pe2 = pe_table[:S].astype(dtype).reshape(1, L)

    TB, ts = _choose_tiles(B, S, D, itemsize, apply_dropout, vmem_budget_bytes)
    tl = ts * D
    n_b = pl.cdiv(B, TB)
    n_s = pl.cdiv(S, ts)

    # Put the axis with more iterations first so megacore sharding (v7x) always
    # sees >= 2 iterations when any exist; keep the seq axis outer when possible
    # so the pe block's DMA is skipped across the inner batch loop.
    if n_s >= n_b:
        grid = (n_s, n_b)
        xmap = lambda si, bi: (bi, si)
        pmap = lambda si, bi: (0, si)
    else:
        grid = (n_b, n_s)
        xmap = lambda bi, si: (bi, si)
        pmap = lambda bi, si: (0, si)

    in_specs = [
        pl.BlockSpec((TB, tl), xmap),   # x
        pl.BlockSpec((1, tl), pmap),    # pe (broadcast over batch rows in-kernel)
    ]
    inputs = [x2, pe2]
    kernel = _add_pe_kernel
    flops = B * L
    bytes_accessed = (2 * B * L + L) * itemsize

    if apply_dropout:
        if rng_key is None:
            rng_key = jax.random.PRNGKey(0)
        # TODO(synk): dropout RNG cannot bit-match torch's stream; mask built with
        # jax.random on the host because pltpu.prng_* has no CPU/interpret lowering.
        keep = jax.random.bernoulli(rng_key, keep_p, (B, L))
        mask = keep.astype(dtype) * jnp.asarray(1.0 / keep_p, dtype)
        inputs.append(mask)
        in_specs.append(pl.BlockSpec((TB, tl), xmap))
        kernel = _add_pe_dropout_kernel
        flops += B * L
        bytes_accessed += B * L * itemsize

    out2 = pl.pallas_call(
        kernel,
        out_shape=jax.ShapeDtypeStruct((B, L), dtype),
        grid=grid,
        in_specs=in_specs,
        out_specs=pl.BlockSpec((TB, tl), xmap),
        compiler_params=pltpu.CompilerParams(
            dimension_semantics=("parallel", "parallel"),
        ),
        cost_estimate=pl.CostEstimate(
            flops=flops, transcendentals=0, bytes_accessed=bytes_accessed
        ),
    )(*inputs)

    return out2.reshape(B, S, D)


# ----------------------------------------------------------------------------
# Test
# ----------------------------------------------------------------------------
if __name__ == "__main__":
    key = jax.random.PRNGKey(0)
    k_x, k_x2, k_drop = jax.random.split(key, 3)

    B, S, d_model = 2, 8, 32
    max_len = 1000
    p_dropout = 0.1

    pe_table = make_pe_table(d_model, max_len)
    x = jax.random.normal(k_x, (B, S, d_model), jnp.float32)

    # Eval-mode forward (dropout == identity): must match the reference exactly.
    y_eval = jax.block_until_ready(
        sinusoidal_positional_encoding(x, pe_table, p=p_dropout, training=False)
    )
    ref = x + pe_table[None, :S, :]
    assert y_eval.shape == (B, S, d_model)
    assert jnp.allclose(y_eval, ref, atol=1e-6, rtol=1e-6)

    # Tiled + ragged-last-block path (no host pad / output slice): force small seq
    # tiles via a tiny VMEM budget with S not a multiple of the tile.
    B2, S2 = 4, 200
    x_big = jax.random.normal(k_x2, (B2, S2, d_model), jnp.float32)
    y_big = jax.block_until_ready(
        sinusoidal_positional_encoding(
            x_big, pe_table, p=0.0, training=False, vmem_budget_bytes=64 * 1024
        )
    )
    ref_big = x_big + pe_table[None, :S2, :]
    assert jnp.allclose(y_big, ref_big, atol=1e-6, rtol=1e-6)

    # Training-mode forward: inverted dropout (fused in-kernel add + scale).
    # Every element must be either 0 (dropped) or (x+pe)/(1-p) (kept).
    y_train = jax.block_until_ready(
        sinusoidal_positional_encoding(
            x, pe_table, p=p_dropout, training=True, rng_key=k_drop
        )
    )
    scaled = ref / (1.0 - p_dropout)
    matches_scaled = jnp.isclose(y_train, scaled, atol=1e-5, rtol=1e-5)
    is_zero = jnp.isclose(y_train, 0.0, atol=1e-6)
    assert bool(jnp.all(matches_scaled | is_zero))

    print("KERNEL_OK")
</pallas_src>

<mosaic_0001>
module attributes {stable_mosaic.version = 11 : i64} {
  func.func @_add_pe_kernel(%arg0: i32, %arg1: i32, %arg2: memref<2x256xf32, #tpu.memory_space<vmem>>, %arg3: memref<1x256xf32, #tpu.memory_space<vmem>>, %arg4: memref<2x256xf32, #tpu.memory_space<vmem>>) attributes {dimension_semantics = [#tpu.dimension_semantics<parallel>, #tpu.dimension_semantics<parallel>], iteration_bounds = array<i64: 1, 1>, scalar_prefetch = 0 : i64, scratch_operands = 0 : i64, tpu.core_type = #tpu.core_type<tc>, window_params = [{transform_indices = @transform_0, window_bounds = array<i64: 2, 256>}, {transform_indices = @transform_1, window_bounds = array<i64: 1, 256>}, {transform_indices = @transform_2, window_bounds = array<i64: 2, 256>}]} {
    %c0 = arith.constant 0 : index
    %c0_0 = arith.constant 0 : index
    %0 = vector.load %arg2[%c0, %c0_0] : memref<2x256xf32, #tpu.memory_space<vmem>>, vector<2x256xf32>
    %c0_1 = arith.constant 0 : index
    %c0_2 = arith.constant 0 : index
    %1 = vector.load %arg3[%c0_1, %c0_2] : memref<1x256xf32, #tpu.memory_space<vmem>>, vector<1x256xf32>
    %2 = vector.broadcast %1 : vector<1x256xf32> to vector<2x256xf32>
    %3 = arith.addf %0, %2 : vector<2x256xf32>
    %c0_3 = arith.constant 0 : index
    %c0_4 = arith.constant 0 : index
    %4 = vector.load %arg4[%c0_3, %c0_4] : memref<2x256xf32, #tpu.memory_space<vmem>>, vector<2x256xf32>
    tpu.vector_store %arg4[%c0_3, %c0_4], %3 {strides = array<i32>} : memref<2x256xf32, #tpu.memory_space<vmem>>, vector<2x256xf32>,
    return
  }
  func.func @transform_0(%arg0: i32, %arg1: i32) -> (i32, i32) {
    %c0_i32 = arith.constant 0 : i32
    return %arg1, %arg0 : i32, i32
  }
  func.func @transform_1(%arg0: i32, %arg1: i32) -> (i32, i32) {
    %c0_i32 = arith.constant 0 : i32
    %c0_i32_0 = arith.constant 0 : i32
    return %c0_i32, %arg0 : i32, i32
  }
  func.func @transform_2(%arg0: i32, %arg1: i32) -> (i32, i32) {
    %c0_i32 = arith.constant 0 : i32
    return %arg1, %arg0 : i32, i32
  }
}

</mosaic_0001>

<bundles_post_ra>
// kernel: tpu_custom_call.1
= control target key start
LH: loop header
LB: loop body
LE: loop exit
PB: predicated region body
PF: predicated region fallthrough
CT: control target
= control target key end

     0   :  { %7 = vsyncpa [#allocation3], 0  ;;  %s157_s0 = inlined_call_operand.hbm [shape: f32[2,256], index: 0, kind: input, shape index: {}]   ;;  %s158_s1 = inlined_call_operand.vmem [shape: f32[1,256], index: 1, kind: input, shape index: {}]   ;;  %s159_s2 = inlined_call_operand.hbm [shape: f32[2,256], index: 2, kind: output, shape index: {}]  }
   0x1   :  { %8 = vsyncpa [#allocation4], 0  ;;  %s112_s9 = smov [#allocation2]   ;;  %s64_s13 = scalar_lea.hbm %s157_s0, 64 }
   0x2   :  { %s15_s10 = sshll.u32 %s112_s9, 4  ;;  %p65_p0 = scmp.ne.s32.totalorder %s157_s0, %s64_s13  ;;  %s16_s10 = int_to_ptr.vmem [resolvable:$true] %s15_s10 }
   0x3   :  { %p68_p1 = scmp.lt.u32.totalorder %s64_s13, %s157_s0 }
   0x5   :  { %p70_p2 = pnand %p68_p1, %p65_p0 }
   0x7   :  { %73 = shalt.err (!%p70_p2)
}
   0x8   :  { %s74_s18 = scalar_lea.vmem %s16_s10, 64  ;;  %p79_p4 = scmp.lt.s32.totalorder %s16_s10, %s16_s10 }
   0x9   :  { %p75_p3 = scmp.ne.s32.totalorder %s16_s10, %s74_s18  ;;  %p80_p5 = scmp.lt.s32.totalorder %s74_s18, %s74_s18 }
   0xb   :  { %p81_p6 = por %p80_p5, %p79_p4 }
   0xd   :  { %p82_p7 = pnand %p81_p6, %p75_p3 }
   0xf   :  { %85 = shalt.err (!%p82_p7)
}
  0x10   :  { %18 = dma.hbm_to_vmem [thread:$0]  %s157_s0, 64, %s16_s10, [#allocation3]  }
  0x11   :  { %108 = dma.done.wait [#allocation3], 64  }
  0x12   :  { %109 = vsyncadd [#allocation3], 4294967232  ;;  %v27_v0 = vlaneseq  ;;  %v113_v1 = vmov 1983009808   ;;  %v25_v7 = vld [vmem:[%s158_s1] sm:$0x3] }
  0x13   :  { %v37_v2 = vunpack.c.l.s4 %v113_v1  ;;  %v24_v12 = vld [vmem:[#allocation2] sm:$0xf]  ;;  %s114_s23 = smov [#allocation5]  }
  0x14   :  { %v28_v3 = vshrl.u32 %v27_v0, 7  ;;  %s52_s0 = sshll.u32 %s114_s23, 4  ;;  %s53_s0 = int_to_ptr.vmem [resolvable:$true] %s52_s0 }
  0x15   :  { %v38_v6 = vunpack.c.0.s8 %v37_v2  ;;  %s86_s24 = scalar_lea.vmem %s53_s0, 64  ;;  %p91_p9 = scmp.lt.s32.totalorder %s53_s0, %s53_s0 }
  0x16   :  { %v29_v4 = vsub.s32 0, %v28_v3  ;;  %v33_v5 = vsub.s32 1, %v28_v3  ;;  %p87_p8 = scmp.ne.s32.totalorder %s53_s0, %s86_s24  ;;  %p92_p10 = scmp.lt.s32.totalorder %s86_s24, %s86_s24 }
  0x17   :  { %v41_v10 = vsub.s32 %v38_v6, %v28_v3 }
  0x18   :  { %v30_v8 = vrot.slane %v25_v7, %v29_v4  ;;  %v34_v9 = vrot.slane %v25_v7, %v33_v5  ;;  %p93_p11 = por %p92_p10, %p91_p9 }
  0x1a   :  { %v35_v11 = vcombine.low %v30_v8, %v34_v9  ;;  %p94_p12 = pnand %p93_p11, %p87_p8 }
  0x1c   :  { %v42_v13 = vrot.slane %v35_v11, %v41_v10 }
  0x1e   :  { %v44_v14 = vadd.f32 %v42_v13, %v24_v12 }
  0x20   :  { %45 = vst [vmem:[#allocation5] sm:$0xf] %v44_v14 }
  0x21   :  { %97 = shalt.err (!%p94_p12)
}
  0x22   :  { %s98_s26 = scalar_lea.hbm %s159_s2, 64 }
  0x23   :  { %p99_p13 = scmp.ne.s32.totalorder %s159_s2, %s98_s26  ;;  %p102_p0 = scmp.lt.u32.totalorder %s98_s26, %s159_s2 }
  0x25   :  { %p104_p1 = pnand %p102_p0, %p99_p13 }
  0x27   :  { %107 = shalt.err (!%p104_p1)
}
  0x28   :  { %55 = dma.vmem_to_hbm [thread:$0]  %s53_s0, 64, %s159_s2, [#allocation4]  }
  0x29   :  { %110 = dma.done.wait [#allocation4], 64  }
  0x2a   :  { %111 = vsyncadd [#allocation4], 4294967232 }
  0x2b   :  { %59 = vsyncpa [#allocation3], 1 }
  0x2c   :  { %60 = vsyncpa [#allocation4], 1 }

</bundles_post_ra>
